<compile_context>
chip_gen: v6e
topology: v6e:2x2x1
jax: 0.10.0
libtpu: 0.0.40
codegen_flags: <defaults>
</compile_context>

<pallas_src>
import functools

import jax
import jax.numpy as jnp
from jax.experimental import pallas as pl
from jax.experimental.pallas import tpu as pltpu


def _round_up(x, m):
    return ((x + m - 1) // m) * m


# ------------- Stage 1: support = features @ W (each row tile computed once) --
def _support_kernel(f_ref, w_ref, s_ref):
    s_ref[...] = jnp.dot(
        f_ref[...], w_ref[...], preferred_element_type=jnp.float32
    ).astype(s_ref.dtype)


# ------------- Stage 2: out = relu(adj @ support), adj streamed exactly once --
def _aggregate_kernel(adj_ref, sup_ref, out_ref, acc_ref, *, active):
    k = pl.program_id(1)

    @pl.when(k == 0)
    def _():
        acc_ref[...] = jnp.zeros_like(acc_ref)

    acc_ref[...] += jnp.dot(
        adj_ref[...], sup_ref[...], preferred_element_type=jnp.float32
    )

    @pl.when(k == pl.num_programs(1) - 1)
    def _():
        res = acc_ref[...]
        if active:                       # static python bool (closure)
            res = jnp.maximum(res, 0.0)
        out_ref[...] = res.astype(out_ref.dtype)


def _fit(x, shape, dtype):
    """Pad-and-cast x into a zero buffer of `shape`/`dtype`; no-op if it already fits."""
    if tuple(x.shape) == tuple(shape) and x.dtype == dtype:
        return x
    buf = jnp.zeros(shape, dtype)
    return buf.at[tuple(slice(0, s) for s in x.shape)].set(x.astype(dtype))


def gnn_layer_pretrain(
    features,
    adj,
    weight,
    *,
    active=True,
    tm=512,                        # row tile of adj / output (multiple of 8)
    tk=1024,                       # contraction (N) tile for adj @ support (multiple of 128)
    matmul_dtype=jnp.bfloat16,     # bf16 inputs, f32 MXU accumulation; use f32 for exact parity
    vmem_limit_bytes=48 * 1024 * 1024,
    vmem_budget_bytes=40 * 1024 * 1024,   # target for auto tile shrinking (v7x-safe)
):
    """Pallas implementation of GNNLayer_pretrain.forward(features, adj, active)."""
    N, in_f = features.shape
    assert adj.shape == (N, N)
    w_in, out_f = weight.shape
    assert w_in == in_f
    assert tm % 8 == 0 and tk % 128 == 0
    out_dtype = features.dtype
    in_bytes = jnp.dtype(matmul_dtype).itemsize
    out_bytes = jnp.dtype(out_dtype).itemsize

    # Lane-dense output feature dimension (multiple of 128 -> unmasked vst).
    outp = _round_up(out_f, 128)

    # --- row tiling of adj / output (independent of contraction pad; no lcm) ---
    tm_eff = min(tm, _round_up(N, 8))
    Mp = _round_up(N, tm_eff)
    # v7x megacore: keep >= 2 tiles on the "parallel" row axis when tiles are big.
    while Mp // tm_eff < 2 and tm_eff >= 512 and tm_eff % 16 == 0:
        tm_eff //= 2

    # --- contraction tiling over adj columns / support rows ---
    tk_eff = min(tk, _round_up(N, 128))
    Kp = _round_up(N, tk_eff)

    # --- keep stage-2 resident VMEM under budget (double-buffered in/out + f32 acc) ---
    def stage2_vmem(tm_e, tk_e):
        return (2 * tm_e * tk_e * in_bytes        # adj tiles
                + 2 * tk_e * outp * in_bytes      # support tiles
                + 2 * tm_e * outp * out_bytes     # output tiles
                + tm_e * outp * 4)                # f32 accumulator

    while stage2_vmem(tm_eff, tk_eff) > vmem_budget_bytes and tk_eff > 128 and tk_eff % 256 == 0:
        tk_eff //= 2
    while stage2_vmem(tm_eff, tk_eff) > vmem_budget_bytes and tm_eff > 8 and tm_eff % 16 == 0:
        tm_eff //= 2

    # --- pad / cast (fused; skipped when already the right shape & dtype) ---
    f_p = _fit(features, (Kp, in_f), matmul_dtype)   # in_f never padded (full-dim blocks)
    w_p = _fit(weight, (in_f, outp), matmul_dtype)
    a_p = _fit(adj, (Mp, Kp), matmul_dtype)

    # ---- stage 1: support = features @ W (rows-only grid, weight held resident) ----
    ts = tk_eff
    def stage1_vmem(ts_e):
        return (2 * ts_e * in_f * in_bytes
                + 2 * in_f * outp * in_bytes
                + 2 * ts_e * outp * in_bytes)
    while stage1_vmem(ts) > vmem_budget_bytes and ts > 8 and ts % 16 == 0:
        ts //= 2

    support = pl.pallas_call(
        _support_kernel,
        out_shape=jax.ShapeDtypeStruct((Kp, outp), matmul_dtype),
        grid_spec=pltpu.PrefetchScalarGridSpec(
            num_scalar_prefetch=0,
            grid=(Kp // ts,),
            in_specs=[
                pl.BlockSpec((ts, in_f), lambda i: (i, 0)),
                pl.BlockSpec((in_f, outp), lambda i: (0, 0)),
            ],
            out_specs=pl.BlockSpec((ts, outp), lambda i: (i, 0)),
        ),
        compiler_params=pltpu.CompilerParams(
            dimension_semantics=("parallel",),
            vmem_limit_bytes=vmem_limit_bytes,
        ),
    )(f_p, w_p)

    # ---- stage 2: out = relu(adj @ support); adj read once, full-outp accumulator ----
    out_p = pl.pallas_call(
        functools.partial(_aggregate_kernel, active=active),
        out_shape=jax.ShapeDtypeStruct((Mp, outp), out_dtype),
        grid_spec=pltpu.PrefetchScalarGridSpec(
            num_scalar_prefetch=0,
            grid=(Mp // tm_eff, Kp // tk_eff),
            in_specs=[
                pl.BlockSpec((tm_eff, tk_eff), lambda i, k: (i, k)),
                pl.BlockSpec((tk_eff, outp), lambda i, k: (k, 0)),
            ],
            out_specs=pl.BlockSpec((tm_eff, outp), lambda i, k: (i, 0)),
            scratch_shapes=[pltpu.VMEM((tm_eff, outp), jnp.float32)],
        ),
        compiler_params=pltpu.CompilerParams(
            dimension_semantics=("parallel", "arbitrary"),
            vmem_limit_bytes=vmem_limit_bytes,
        ),
    )(a_p, support)

    return out_p[:N, :out_f]


def xavier_uniform(key, in_features, out_features, dtype=jnp.float32):
    # Matches torch.nn.init.xavier_uniform_ (gain=1): U(-a, a), a = sqrt(6/(fan_in+fan_out))
    a = jnp.sqrt(6.0 / (in_features + out_features))
    return jax.random.uniform(
        key, (in_features, out_features), dtype=dtype, minval=-a, maxval=a
    )


if __name__ == "__main__":
    key = jax.random.PRNGKey(0)
    k_feat, k_adj, k_w = jax.random.split(key, 3)

    N = 16            # number of graph nodes (small test shape)
    in_features = 32
    out_features = 8

    features = jax.random.normal(k_feat, (N, in_features), dtype=jnp.float32)
    # simple dense row-normalized "adjacency" (deterministic, synthetic)
    adj_raw = jax.random.uniform(k_adj, (N, N), dtype=jnp.float32)
    adj = adj_raw / jnp.sum(adj_raw, axis=1, keepdims=True)

    weight = xavier_uniform(k_w, in_features, out_features)

    # pure-JAX reference
    ref = jnp.maximum(adj @ (features @ weight), 0.0)

    # exact-parity path (f32 throughout)
    out_f32 = gnn_layer_pretrain(features, adj, weight, matmul_dtype=jnp.float32)
    out_f32 = jax.block_until_ready(out_f32)
    assert out_f32.shape == (N, out_features)
    assert jnp.allclose(out_f32, ref, atol=1e-5, rtol=1e-5), "f32 path mismatch vs reference"

    # default (bf16 inputs, f32 accumulation) fast path
    out_bf16 = gnn_layer_pretrain(features, adj, weight)
    out_bf16 = jax.block_until_ready(out_bf16)
    assert out_bf16.shape == (N, out_features)
    assert jnp.allclose(out_bf16, ref, atol=5e-2, rtol=5e-2), "bf16 path mismatch vs reference"

    print("KERNEL_OK")
</pallas_src>

<mosaic_0001>
module attributes {stable_mosaic.version = 11 : i64} {
  func.func @_support_kernel(%arg0: i32, %arg1: memref<128x32xf32, #tpu.memory_space<vmem>>, %arg2: memref<32x128xf32, #tpu.memory_space<vmem>>, %arg3: memref<128x128xf32, #tpu.memory_space<vmem>>) attributes {dimension_semantics = [#tpu.dimension_semantics<parallel>], iteration_bounds = array<i64: 1>, scalar_prefetch = 0 : i64, scratch_operands = 0 : i64, tpu.core_type = #tpu.core_type<tc>, window_params = [{transform_indices = @transform_0, window_bounds = array<i64: 128, 32>}, {pipeline_mode = #tpu.pipeline_mode<synchronous>, transform_indices = @transform_1, window_bounds = array<i64: 32, 128>}, {transform_indices = @transform_2, window_bounds = array<i64: 128, 128>}]} {
    %c0 = arith.constant 0 : index
    %c0_0 = arith.constant 0 : index
    %0 = vector.load %arg1[%c0, %c0_0] : memref<128x32xf32, #tpu.memory_space<vmem>>, vector<128x32xf32>
    %c0_1 = arith.constant 0 : index
    %c0_2 = arith.constant 0 : index
    %1 = vector.load %arg2[%c0_1, %c0_2] : memref<32x128xf32, #tpu.memory_space<vmem>>, vector<32x128xf32>
    %cst = arith.constant dense<0.000000e+00> : vector<128x128xf32>
    %2 = tpu.matmul %0, %1, %cst {dimension_numbers = #tpu.dot_dimension_numbers<[1], [0], [0], [1], [0, 0, 1, 1], [], []>} : vector<128x32xf32>, vector<32x128xf32>, vector<128x128xf32> -> vector<128x128xf32>
    %c0_3 = arith.constant 0 : index
    %c0_4 = arith.constant 0 : index
    %3 = vector.load %arg3[%c0_3, %c0_4] : memref<128x128xf32, #tpu.memory_space<vmem>>, vector<128x128xf32>
    tpu.vector_store %arg3[%c0_3, %c0_4], %2 {strides = array<i32>} : memref<128x128xf32, #tpu.memory_space<vmem>>, vector<128x128xf32>,
    return
  }
  func.func @transform_0(%arg0: i32) -> (i32, i32) {
    %c0_i32 = arith.constant 0 : i32
    %c0_i32_0 = arith.constant 0 : i32
    return %arg0, %c0_i32 : i32, i32
  }
  func.func @transform_1(%arg0: i32) -> (i32, i32) {
    %c0_i32 = arith.constant 0 : i32
    %c0_i32_0 = arith.constant 0 : i32
    %c0_i32_1 = arith.constant 0 : i32
    return %c0_i32, %c0_i32_0 : i32, i32
  }
  func.func @transform_2(%arg0: i32) -> (i32, i32) {
    %c0_i32 = arith.constant 0 : i32
    %c0_i32_0 = arith.constant 0 : i32
    return %arg0, %c0_i32 : i32, i32
  }
}

</mosaic_0001>

<bundles_post_ra>
// kernel: tpu_custom_call.1
= control target key start
LH: loop header
LB: loop body
LE: loop exit
PB: predicated region body
PF: predicated region fallthrough
CT: control target
= control target key end

     0   :  { %vm32_vm0 = vcmask 261120   ;;  %s456_s0 = inlined_call_operand.vmem [shape: f32[128,32], index: 0, kind: input, shape index: {}]   ;;  %s457_s1 = inlined_call_operand.vmem [shape: f32[32,128], index: 1, kind: input, shape index: {}]   ;;  %s458_s2 = inlined_call_operand.hbm [shape: f32[128,128], index: 2, kind: output, shape index: {}]  }
   0x1   :  { %v31_v0 = vld [vmem:[%s457_s1 + $0x18] sm:$0xff]  ;;  %v30_v1 = vld [vmem:[%s457_s1 + $0x10] sm:$0xff]  ;;  %v29_v2 = vld [vmem:[%s457_s1 + $0x8] sm:$0xff] }
   0x2   :  { %294 = vmatprep.subr.mxu0 %v31_v0  ;;  %326 = vmatprep.subr.mxu1 %v31_v0  ;;  %v28_v3 = vld [vmem:[%s457_s1] sm:$0xff] }
   0x3   :  { %295 = vmatpush3.msra.mxu0 %v31_v0  ;;  %330 = vmatpush3.msra.mxu1 %v31_v0  ;;  %v12_v4 = vld [vmem:[%s456_s0] sm:$0xff] }
   0x4   :  { %296 = vmatprep.subr.mxu0 %v30_v1  ;;  %327 = vmatprep.subr.mxu1 %v30_v1  ;;  %v20_v5 = vld [vmem:[%s456_s0 + $0x40] sm:$0xff] }
   0x5   :  { %297 = vmatpush3.msra.mxu0 %v30_v1  ;;  %331 = vmatpush3.msra.mxu1 %v30_v1 }
   0x6   :  { %298 = vmatprep.subr.mxu0 %v29_v2  ;;  %328 = vmatprep.subr.mxu1 %v29_v2 }
   0x7   :  { %299 = vmatpush3.msra.mxu0 %v29_v2  ;;  %332 = vmatpush3.msra.mxu1 %v29_v2 }
   0x8   :  { %7 = vsyncpa [#allocation3], 0  ;;  %300 = vmatprep.subr.mxu0 %v28_v3  ;;  %329 = vmatprep.subr.mxu1 %v28_v3  ;;  %v13_v6 = vld [vmem:[%s456_s0 + $0x8] sm:$0xff]  ;;  %v14_v8 = vld [vmem:[%s456_s0 + $0x10] sm:$0xff] }
   0x9   :  { %v21_v7 = vld [vmem:[%s456_s0 + $0x48] sm:$0xff]  ;;  %301 = vmatpush3.msra.mxu0 %v28_v3  ;;  %333 = vmatpush3.msra.mxu1 %v28_v3  ;;  %v22_v9 = vld [vmem:[%s456_s0 + $0x50] sm:$0xff]  ;;  %v15_v10 = vld [vmem:[%s456_s0 + $0x18] sm:$0xff] }
   0xa   :  { %302 = vmatprep.mubr.msk.f32.mxu0 %vm32_vm0, %v12_v4  ;;  %314 = vmatprep.mubr.msk.f32.mxu1 %vm32_vm0, %v20_v5  ;;  %v23_v11 = vld [vmem:[%s456_s0 + $0x58] sm:$0xff]  ;;  %v16_v12 = vld [vmem:[%s456_s0 + $0x20] sm:$0xff]  ;;  %v17_v14 = vld [vmem:[%s456_s0 + $0x28] sm:$0xff] }
   0xb   :  { %303 = vmatmul.mubr.msk.f32.vlgmr.msra.gmra.mxu0 %vm32_vm0, %v13_v6  ;;  %315 = vmatmul.mubr.msk.f32.vlgmr.msra.gmra.mxu1 %vm32_vm0, %v21_v7  ;;  %v24_v13 = vld [vmem:[%s456_s0 + $0x60] sm:$0xff]  ;;  %v25_v15 = vld [vmem:[%s456_s0 + $0x68] sm:$0xff]  ;;  %v18_v16 = vld [vmem:[%s456_s0 + $0x30] sm:$0xff] }
   0xc   :  { %305 = vmatprep.mubr.msk.f32.mxu0 %vm32_vm0, %v14_v8  ;;  %317 = vmatprep.mubr.msk.f32.mxu1 %vm32_vm0, %v22_v9  ;;  %v26_v17 = vld [vmem:[%s456_s0 + $0x70] sm:$0xff]  ;;  %v19_v18 = vld [vmem:[%s456_s0 + $0x38] sm:$0xff] }
   0xd   :  { %v27_v19 = vld [vmem:[%s456_s0 + $0x78] sm:$0xff]  ;;  %s359_s0 = smov [#allocation2]  }
   0xe   :  { %s247_s20 = sshll.u32 %s359_s0, 4  ;;  %s248_s20 = int_to_ptr.vmem [resolvable:$true] %s247_s20 }
   0xf   :  { %306 = vmatmul.mubr.msk.f32.gmra.mxu0 %vm32_vm0, %v15_v10  ;;  %318 = vmatmul.mubr.msk.f32.gmra.mxu1 %vm32_vm0, %v23_v11  ;;  %s337_s21 = scalar_lea.vmem %s248_s20, 2048  ;;  %p342_p1 = scmp.lt.s32.totalorder %s248_s20, %s248_s20 }
  0x10   :  { %308 = vmatprep.mubr.msk.f32.mxu0 %vm32_vm0, %v16_v12  ;;  %320 = vmatprep.mubr.msk.f32.mxu1 %vm32_vm0, %v24_v13  ;;  %p338_p0 = scmp.ne.s32.totalorder %s248_s20, %s337_s21  ;;  %p343_p2 = scmp.lt.s32.totalorder %s337_s21, %s337_s21 }
  0x12   :  { %p344_p3 = por %p343_p2, %p342_p1 }
  0x13   :  { %309 = vmatmul.mubr.msk.f32.gmra.mxu0 %vm32_vm0, %v17_v14  ;;  %321 = vmatmul.mubr.msk.f32.gmra.mxu1 %vm32_vm0, %v25_v15 }
  0x14   :  { %311 = vmatprep.mubr.msk.f32.mxu0 %vm32_vm0, %v18_v16  ;;  %323 = vmatprep.mubr.msk.f32.mxu1 %vm32_vm0, %v26_v17  ;;  %p345_p4 = pnand %p344_p3, %p338_p0 }
  0x17   :  { %312 = vmatmul.mubr.msk.f32.gmra.mxu0 %vm32_vm0, %v19_v18  ;;  %324 = vmatmul.mubr.msk.f32.gmra.mxu1 %vm32_vm0, %v27_v19 }
  0xcb   :  { %v304_v20 = vpop.f32.mrf.mxu0  ;;  %v316_v21 = vpop.f32.mrf.mxu1 }
  0xcc   :  { %227 = vst [vmem:[#allocation2 + $0x8] sm:$0xff] %v304_v20  ;;  %235 = vst [vmem:[#allocation2 + $0x48] sm:$0xff] %v316_v21 }
  0xcd   :  { %v147_v22 = vpop.f32.mrf.mxu0  ;;  %v187_v23 = vpop.f32.mrf.mxu1 }
  0xce   :  { %226 = vst [vmem:[#allocation2] sm:$0xff] %v147_v22  ;;  %234 = vst [vmem:[#allocation2 + $0x40] sm:$0xff] %v187_v23 }
  0xcf   :  { %v307_v24 = vpop.f32.mrf.mxu0  ;;  %v319_v25 = vpop.f32.mrf.mxu1 }
  0xd0   :  { %229 = vst [vmem:[#allocation2 + $0x18] sm:$0xff] %v307_v24  ;;  %237 = vst [vmem:[#allocation2 + $0x58] sm:$0xff] %v319_v25 }
  0xd1   :  { %v157_v26 = vpop.f32.mrf.mxu0  ;;  %v197_v27 = vpop.f32.mrf.mxu1 }
  0xd2   :  { %228 = vst [vmem:[#allocation2 + $0x10] sm:$0xff] %v157_v26  ;;  %236 = vst [vmem:[#allocation2 + $0x50] sm:$0xff] %v197_v27 }
  0xd3   :  { %v310_v28 = vpop.f32.mrf.mxu0  ;;  %v322_v29 = vpop.f32.mrf.mxu1 }
  0xd4   :  { %231 = vst [vmem:[#allocation2 + $0x28] sm:$0xff] %v310_v28  ;;  %239 = vst [vmem:[#allocation2 + $0x68] sm:$0xff] %v322_v29 }
  0xd5   :  { %v167_v30 = vpop.f32.mrf.mxu0  ;;  %v207_v31 = vpop.f32.mrf.mxu1 }
  0xd6   :  { %230 = vst [vmem:[#allocation2 + $0x20] sm:$0xff] %v167_v30  ;;  %238 = vst [vmem:[#allocation2 + $0x60] sm:$0xff] %v207_v31 }
  0xd7   :  { %v313_v32 = vpop.f32.mrf.mxu0  ;;  %v325_v33 = vpop.f32.mrf.mxu1 }
  0xd8   :  { %233 = vst [vmem:[#allocation2 + $0x38] sm:$0xff] %v313_v32  ;;  %241 = vst [vmem:[#allocation2 + $0x78] sm:$0xff] %v325_v33 }
  0xd9   :  { %v177_v34 = vpop.f32.mrf.mxu0  ;;  %v217_v35 = vpop.f32.mrf.mxu1 }
  0xda   :  { %232 = vst [vmem:[#allocation2 + $0x30] sm:$0xff] %v177_v34  ;;  %240 = vst [vmem:[#allocation2 + $0x70] sm:$0xff] %v217_v35 }
  0xdb   :  { %348 = shalt.err (!%p345_p4)
}
  0xdc   :  { %s360_s22 = smov 128   ;;  %s361_s1 = smov 8  }
  0xdd   :  { %253 = dma.vmem_to_hbm [thread:$0]  %s248_s20, 2048, %s458_s2, [#allocation3], %s360_s22, %s360_s22, %s361_s1  }
  0xde   :  { %357 = dma.done.wait [#allocation3], 2048  }
  0xdf   :  { %358 = vsyncadd [#allocation3], 4294965248 }
  0xe0   :  { %257 = vsyncpa [#allocation3], 1 }

</bundles_post_ra>
